<compile_context>
chip_gen: v7x
topology: tpu7x:2x2x1
jax: 0.10.0
libtpu: 0.0.40
codegen_flags: <defaults>
</compile_context>

<pallas_src>
import math

import jax
import jax.numpy as jnp
from jax.experimental import pallas as pl
from jax.experimental.pallas import tpu as pltpu


# ----------------------------- in-kernel helpers -----------------------------

def _layernorm(x, gamma, beta, eps=1e-5):
    mu = jnp.mean(x, axis=-1, keepdims=True)
    var = jnp.mean((x - mu) ** 2, axis=-1, keepdims=True)
    return (x - mu) * jax.lax.rsqrt(var + eps) * gamma + beta


def _gelu_tanh(x):
    c = math.sqrt(2.0 / math.pi)
    return 0.5 * x * (1.0 + jnp.tanh(c * (x + 0.044715 * x * x * x)))


def _sigmoid(x):
    return 1.0 / (1.0 + jnp.exp(-x))


def _round_up(n, m):
    return -(-n // m) * m


# ------------------------- fused encoder-stack kernel -------------------------

def make_encoder_stack_kernel(B, T, T_out, d_model, nhead, grid_length,
                              unfold_latent=True, has_stage=True):
    assert d_model % nhead == 0
    H, hd, G = nhead, d_model // nhead, grid_length
    bf16 = jnp.bfloat16
    f32 = jnp.float32

    def kernel(cond_ref, mel_ref, harm_ref, z_ref, stage_ref,
               pos_ref, wc_ref, bc_ref, wm_ref, bm_ref, wg_ref, gb_ref,
               wx_ref, ws_ref, bsp_ref, ing_ref, inb_ref,
               wqkv_ref, bqkv_ref, wo_ref, bo_ref,
               n1g_ref, n1b_ref, w1_ref, b1_ref, w2_ref, b2_ref,
               n2g_ref, n2b_ref,
               og_ref, ob_ref, wh_ref, bh_ref,
               o_ref, x_sc):
        l = pl.program_id(0)
        last = pl.num_programs(0) - 1

        # ---- front-end (only at l == 0): build guided_seq, stage-proj, input LN
        @pl.when(l == 0)
        def _frontend():
            cond_all = jnp.dot(cond_ref[...], wc_ref[...],
                               preferred_element_type=f32) + bc_ref[...]      # (B, D)
            mel_all = jnp.dot(mel_ref[...], wm_ref[...],
                              preferred_element_type=f32) + bm_ref[...]       # (B*G, D)
            z_all = jnp.dot(z_ref[...], wg_ref[...],
                            preferred_element_type=f32) + gb_ref[...]         # (B, D)
            harm_all = harm_ref[...]                                          # (B*G, D)
            pos = pos_ref[...]                                                # (T, D)

            rows = []
            for b in range(B):                                  # static python loop
                seq_b = jnp.concatenate(
                    [cond_all[b:b + 1],
                     mel_all[b * G:(b + 1) * G],
                     harm_all[b * G:(b + 1) * G]], axis=0) + pos              # (T, D)
                if unfold_latent:
                    seq_b = seq_b + z_all[b:b + 1]
                else:
                    ridx = jax.lax.broadcasted_iota(jnp.int32, (T, 1), 0)
                    seq_b = seq_b + jnp.where(ridx == 0, z_all[b:b + 1], 0.0)
                rows.append(seq_b)
            seq = jnp.concatenate(rows, axis=0)                               # (B*T, D)

            if has_stage:
                # stage_proj fused: cat([seq, stage]) @ W  ==  seq @ W_x + stage @ W_s
                stage_all = jnp.dot(stage_ref[...], ws_ref[...],
                                    preferred_element_type=f32)               # (B, D)
                sbc = jnp.concatenate(
                    [jnp.broadcast_to(stage_all[b:b + 1], (T, d_model))
                     for b in range(B)], axis=0)                              # (B*T, D)
                seq = (jnp.dot(seq.astype(bf16), wx_ref[...],
                               preferred_element_type=f32) + sbc + bsp_ref[...])

            # single unmasked full-tile store
            x_sc[...] = _layernorm(seq, ing_ref[...], inb_ref[...])

        # ---- transformer encoder layer l (post-norm; dropout = eval identity)
        x = x_sc[...]                                            # (B*T, D) f32
        qkv = jnp.dot(x.astype(bf16), wqkv_ref[0],
                      preferred_element_type=f32) + bqkv_ref[0]  # (B*T, 3D)
        q = qkv[:, 0:d_model]                                    # scale baked into Wq
        k = qkv[:, d_model:2 * d_model]
        v = qkv[:, 2 * d_model:3 * d_model]

        lane = jax.lax.broadcasted_iota(jnp.int32, (1, d_model), 1)
        attn_rows = []
        for b in range(B):                                       # static python loop
            lo = b * T
            qb = q[lo:lo + T]                                    # (T, D) f32
            kb16 = k[lo:lo + T].astype(bf16)
            vb16 = v[lo:lo + T].astype(bf16)
            ob = jnp.zeros((T, d_model), f32)
            for h in range(H):                                   # static python loop
                mh = ((lane >= h * hd) & (lane < (h + 1) * hd)).astype(f32)
                # masked-Q full-depth contraction == head-h score
                s = jnp.einsum('td,sd->ts', (qb * mh).astype(bf16), kb16,
                               preferred_element_type=f32)       # (T, T)
                s = s - jnp.max(s, axis=-1, keepdims=True)
                p = jnp.exp(s)
                p = p * pl.reciprocal(jnp.sum(p, axis=-1, keepdims=True),
                                      approx=True)
                # masked-V keeps head h's output in its own lane range
                ob = ob + jnp.dot(p.astype(bf16), vb16 * mh.astype(bf16),
                                  preferred_element_type=f32)
            attn_rows.append(ob)
        attn = jnp.concatenate(attn_rows, axis=0)                # (B*T, D) == concat heads
        attn = jnp.dot(attn.astype(bf16), wo_ref[0],
                       preferred_element_type=f32) + bo_ref[0]

        x = _layernorm(x + attn, n1g_ref[0], n1b_ref[0])         # norm1
        h1 = jnp.dot(x.astype(bf16), w1_ref[0],
                     preferred_element_type=f32) + b1_ref[0]     # (B*T, 4D)
        h1 = _gelu_tanh(h1)
        y = jnp.dot(h1.astype(bf16), w2_ref[0],
                    preferred_element_type=f32) + b2_ref[0]
        x = _layernorm(x + y, n2g_ref[0], n2b_ref[0])            # norm2
        x_sc[...] = x

        # ---- output LayerNorm + lane-dense head, fused onto the last layer
        @pl.when(l == last)
        def _head():
            if T_out == T:
                xe_in = x
            else:
                xe_in = jnp.concatenate(
                    [x[b * T + (T - T_out):(b + 1) * T] for b in range(B)], axis=0)
            xe = _layernorm(xe_in, og_ref[...], ob_ref[...])
            o_ref[...] = jnp.dot(xe.astype(bf16), wh_ref[...],
                                 preferred_element_type=f32) + bh_ref[...]

    return kernel


# ----------------------------- GuidanceVAE encoder ----------------------------

def make_vae_encoder_kernel(n_steps, batch, hidden):
    Hv = hidden

    def kernel(emb_ref, eps_ref, wih_ref, whh_ref, b_ref,
               wmu_ref, bmu_ref, wlv_ref, blv_ref, z_ref, h_sc, c_sc, xp_sc):
        # hoisted time-parallel input projection: one lane-dense (S*B,E)x(E,4Hv)
        xp_sc[...] = (jnp.dot(emb_ref[...], wih_ref[...],
                              preferred_element_type=jnp.float32) + b_ref[...])
        h_sc[...] = jnp.zeros_like(h_sc)
        c_sc[...] = jnp.zeros_like(c_sc)

        @pl.loop(0, n_steps)
        def _(t):
            xp = xp_sc[pl.ds(t * batch, batch), :]               # (B, 4Hv)
            gates = xp + jnp.dot(h_sc[...], whh_ref[...],
                                 preferred_element_type=jnp.float32)
            i_g = _sigmoid(gates[:, 0:Hv])                       # gate order [i, f, g, o]
            f_g = _sigmoid(gates[:, Hv:2 * Hv])
            g_g = jnp.tanh(gates[:, 2 * Hv:3 * Hv])
            o_g = _sigmoid(gates[:, 3 * Hv:4 * Hv])
            c_new = f_g * c_sc[...] + i_g * g_g
            c_sc[...] = c_new
            h_sc[...] = o_g * jnp.tanh(c_new)

        h_n = h_sc[...]
        mu = jnp.dot(h_n, wmu_ref[...], preferred_element_type=jnp.float32) + bmu_ref[...]
        logvar = jnp.dot(h_n, wlv_ref[...], preferred_element_type=jnp.float32) + blv_ref[...]
        z_ref[...] = mu + eps_ref[...] * jnp.exp(0.5 * logvar)   # reparameterize

    return kernel


def vae_encode_z(vae_params, guiding_harmony, eps):
    emb = vae_params['embedding'][guiding_harmony]               # (B, S, E) gather = glue
    B, S, E = emb.shape
    emb2 = jnp.transpose(emb, (1, 0, 2)).reshape(S * B, E)       # time-major rows
    Hv = vae_params['w_hh'].shape[0]
    Lz = vae_params['w_mu'].shape[1]
    args = [emb2, eps, vae_params['w_ih'], vae_params['w_hh'], vae_params['b_gate'],
            vae_params['w_mu'], vae_params['b_mu'], vae_params['w_lv'], vae_params['b_lv']]
    in_specs = [pl.BlockSpec(a.shape, lambda i, n=a.ndim: (0,) * n) for a in args]
    return pl.pallas_call(
        make_vae_encoder_kernel(S, B, Hv),
        out_shape=jax.ShapeDtypeStruct((B, Lz), jnp.float32),
        grid=(1,),
        in_specs=in_specs,
        out_specs=pl.BlockSpec((B, Lz), lambda i: (0, 0)),
        scratch_shapes=[pltpu.VMEM((B, Hv), jnp.float32),
                        pltpu.VMEM((B, Hv), jnp.float32),
                        pltpu.VMEM((S * B, 4 * Hv), jnp.float32)],
    )(*args)


# ------------------------------- pallas_call glue -----------------------------

def _rep_spec(a):
    n = a.ndim
    return pl.BlockSpec(a.shape, lambda l, n=n: (0,) * n)


def _layer_spec(a):
    return pl.BlockSpec((1,) + a.shape[1:], lambda l: (l, 0, 0))


def guided_mlmh_forward(params, conditioning_vec, melody_grid, harmony_tokens,
                        guiding_harmony, stage_indices, *, rng_key,
                        unfold_latent=True):
    p = params
    B = conditioning_vec.shape[0]
    G = melody_grid.shape[1]
    T = 1 + 2 * G
    T_out = min(256, T)
    D = p['cond_w'].shape[1]
    L = p['wqkv'].shape[0]
    H = p['nhead']
    Ds = p['stage_w_s'].shape[0]
    Lz = p['guid_w'].shape[0]
    Vp = p['head_w'].shape[1]
    vocab = p['vocab_size']

    # --- GuidanceVAE encoder: z = mu + eps * exp(0.5 * logvar) ---
    eps = jax.random.normal(rng_key, (B, Lz), dtype=jnp.float32)
    z = vae_encode_z(p['vae'], guiding_harmony, eps)             # (B, Lz)

    # --- embedding gathers / reshapes (glue; contiguous, no HBM-wide concats) ---
    if harmony_tokens is not None:
        harm2 = p['harmony_embedding'][harmony_tokens].reshape(B * G, D)
    else:
        harm2 = jnp.zeros((B * G, D), jnp.float32)
    mel2 = melody_grid.reshape(B * G, melody_grid.shape[-1])
    cond2 = conditioning_vec                                     # (B, Dc)

    if stage_indices is not None:
        stage2 = p['stage_embedding'][stage_indices]             # (B, Ds)
        wx, ws, bsp = p['stage_w_x'], p['stage_w_s'], p['stage_b']
        has_stage = True
    else:
        stage2 = jnp.zeros((B, Ds), jnp.float32)
        wx = jnp.zeros_like(p['stage_w_x'])                      # unused (skipped statically)
        ws = jnp.zeros_like(p['stage_w_s'])
        bsp = jnp.zeros_like(p['stage_b'])
        has_stage = False

    batch_in = [cond2, mel2, harm2, z, stage2]
    front_in = [p['pos'], p['cond_w'], p['cond_b'], p['mel_w'], p['mel_b'],
                p['guid_w'], p['guid_b'], wx, ws, bsp, p['in_g'], p['in_b']]
    layer_in = [p['wqkv'], p['bqkv'], p['wo'], p['bo'], p['n1g'], p['n1b'],
                p['w1'], p['b1'], p['w2'], p['b2'], p['n2g'], p['n2b']]
    head_in = [p['out_g'], p['out_b'], p['head_w'], p['head_b']]

    kernel = make_encoder_stack_kernel(B, T, T_out, D, H, G,
                                       unfold_latent=unfold_latent,
                                       has_stage=has_stage)
    out2 = pl.pallas_call(
        kernel,
        out_shape=jax.ShapeDtypeStruct((B * T_out, Vp), jnp.float32),
        grid=(L,),
        in_specs=([_rep_spec(a) for a in batch_in]
                  + [_rep_spec(a) for a in front_in]
                  + [_layer_spec(a) for a in layer_in]
                  + [_rep_spec(a) for a in head_in]),
        out_specs=pl.BlockSpec((B * T_out, Vp), lambda l: (0, 0)),
        scratch_shapes=[pltpu.VMEM((B * T, D), jnp.float32)],
        compiler_params=pltpu.CompilerParams(
            dimension_semantics=("arbitrary",),
            vmem_limit_bytes=32 * 1024 * 1024),   # usage ~2 MiB; safe on v7x 64 MiB too
    )(*batch_in, *front_in, *layer_in, *head_in)

    return out2.reshape(B, T_out, Vp)[:, :, :vocab]   # strip lane padding of the head


# --------------------------------- parameters ---------------------------------

def init_params(key, *, chord_vocab_size, d_model, nhead, num_layers,
                conditioning_dim, pianoroll_dim, grid_length,
                stage_embedding_dim, max_stages,
                vae_embedding_dim, vae_hidden_dim, latent_dim):
    T = 1 + 2 * grid_length
    hd = d_model // nhead
    assert nhead * hd == d_model
    scale = 1.0 / math.sqrt(hd)
    Vp = _round_up(chord_vocab_size, 128)
    kit = iter(jax.random.split(key, 64))

    def nrm(shape, s=0.05):
        return (s * jax.random.normal(next(kit), shape)).astype(jnp.float32)

    bf = jnp.bfloat16
    L, D = num_layers, d_model

    head_w = jnp.pad(nrm((D, chord_vocab_size)), ((0, 0), (0, Vp - chord_vocab_size)))
    head_b = jnp.pad(nrm((1, chord_vocab_size), 0.01), ((0, 0), (0, Vp - chord_vocab_size)))

    # fused QKV weights (L, D, 3D) with the 1/sqrt(hd) score scale baked into Q
    wq, wk, wv = nrm((L, D, D)), nrm((L, D, D)), nrm((L, D, D))
    bq, bk, bv = nrm((L, 1, D), 0.01), nrm((L, 1, D), 0.01), nrm((L, 1, D), 0.01)
    wqkv = jnp.concatenate([wq * scale, wk, wv], axis=-1).astype(bf)
    bqkv = jnp.concatenate([bq * scale, bk, bv], axis=-1)

    return dict(
        vocab_size=chord_vocab_size, nhead=nhead,
        # GuidedMLMH front-end (weights stored pre-transposed [in, out])
        cond_w=nrm((conditioning_dim, D)), cond_b=nrm((1, D), 0.01),
        mel_w=nrm((pianoroll_dim, D)), mel_b=nrm((1, D), 0.01),
        harmony_embedding=nrm((chord_vocab_size, D), 1.0),
        guid_w=nrm((latent_dim, D)), guid_b=nrm((1, D), 0.01),
        pos=nrm((T, D), 1.0),
        # GridMLMMelHarmEncoder
        stage_embedding=nrm((max_stages, stage_embedding_dim), 1.0),
        stage_w_x=nrm((D, D)).astype(bf), stage_w_s=nrm((stage_embedding_dim, D)),
        stage_b=nrm((1, D), 0.01),
        in_g=jnp.ones((1, D), jnp.float32), in_b=jnp.zeros((1, D), jnp.float32),
        out_g=jnp.ones((1, D), jnp.float32), out_b=jnp.zeros((1, D), jnp.float32),
        head_w=head_w.astype(bf), head_b=head_b,
        # stacked per-layer weights (leading L axis, streamed once by the kernel)
        wqkv=wqkv, bqkv=bqkv,
        wo=nrm((L, D, D)).astype(bf), bo=nrm((L, 1, D), 0.01),
        n1g=jnp.ones((L, 1, D), jnp.float32), n1b=jnp.zeros((L, 1, D), jnp.float32),
        w1=nrm((L, D, 4 * D)).astype(bf), b1=nrm((L, 1, 4 * D), 0.01),
        w2=nrm((L, 4 * D, D)).astype(bf), b2=nrm((L, 1, D), 0.01),
        n2g=jnp.ones((L, 1, D), jnp.float32), n2b=jnp.zeros((L, 1, D), jnp.float32),
        # GuidanceVAE (encoder path; packed gate order [i, f, g, o], b = b_ih + b_hh)
        vae=dict(
            embedding=nrm((chord_vocab_size, vae_embedding_dim), 1.0),
            w_ih=nrm((vae_embedding_dim, 4 * vae_hidden_dim)),
            w_hh=nrm((vae_hidden_dim, 4 * vae_hidden_dim)),
            b_gate=nrm((1, 4 * vae_hidden_dim), 0.01),
            w_mu=nrm((vae_hidden_dim, latent_dim)), b_mu=nrm((1, latent_dim), 0.01),
            w_lv=nrm((vae_hidden_dim, latent_dim)), b_lv=nrm((1, latent_dim), 0.01),
        ),
    )


# ------------------------------------ main -------------------------------------

if __name__ == "__main__":
    B = 2
    grid_length = 4                       # seq_len = 1 + 2*grid_length = 9
    d_model, nhead, num_layers = 128, 4, 2
    conditioning_dim, pianoroll_dim = 16, 16
    chord_vocab_size = 48
    stage_embedding_dim, max_stages = 16, 6
    latent_dim = 16                       # == guidance_dim (module ties them via usage)
    vae_embedding_dim, vae_hidden_dim = 16, 32
    guide_len = 8

    root = jax.random.PRNGKey(0)
    kp, kc, km, kh, kg, ks, ke = jax.random.split(root, 7)
    params = init_params(
        kp, chord_vocab_size=chord_vocab_size, d_model=d_model, nhead=nhead,
        num_layers=num_layers, conditioning_dim=conditioning_dim,
        pianoroll_dim=pianoroll_dim, grid_length=grid_length,
        stage_embedding_dim=stage_embedding_dim, max_stages=max_stages,
        vae_embedding_dim=vae_embedding_dim, vae_hidden_dim=vae_hidden_dim,
        latent_dim=latent_dim)

    conditioning_vec = jax.random.normal(kc, (B, conditioning_dim), dtype=jnp.float32)
    melody_grid = jax.random.normal(km, (B, grid_length, pianoroll_dim), dtype=jnp.float32)
    harmony_tokens = jax.random.randint(kh, (B, grid_length), 0, chord_vocab_size)
    guiding_harmony = jax.random.randint(kg, (B, guide_len), 0, chord_vocab_size)
    stage_indices = jax.random.randint(ks, (B,), 0, max_stages)

    out = guided_mlmh_forward(params, conditioning_vec, melody_grid,
                              harmony_tokens, guiding_harmony, stage_indices,
                              rng_key=ke)
    out = jax.block_until_ready(out)

    T = 1 + 2 * grid_length
    assert out.shape == (B, min(256, T), chord_vocab_size), out.shape
    assert bool(jnp.all(jnp.isfinite(out)))
    print("KERNEL_OK")
</pallas_src>

<mosaic_0001>
module attributes {stable_mosaic.version = 11 : i64} {
  func.func @kernel(%arg0: i32, %arg1: memref<16x16xf32, #tpu.memory_space<vmem>>, %arg2: memref<2x16xf32, #tpu.memory_space<vmem>>, %arg3: memref<16x128xf32, #tpu.memory_space<vmem>>, %arg4: memref<32x128xf32, #tpu.memory_space<vmem>>, %arg5: memref<1x128xf32, #tpu.memory_space<vmem>>, %arg6: memref<32x16xf32, #tpu.memory_space<vmem>>, %arg7: memref<1x16xf32, #tpu.memory_space<vmem>>, %arg8: memref<32x16xf32, #tpu.memory_space<vmem>>, %arg9: memref<1x16xf32, #tpu.memory_space<vmem>>, %arg10: memref<2x16xf32, #tpu.memory_space<vmem>>, %arg11: memref<2x32xf32, #tpu.memory_space<vmem>>, %arg12: memref<2x32xf32, #tpu.memory_space<vmem>>, %arg13: memref<16x128xf32, #tpu.memory_space<vmem>>) attributes {dimension_semantics = [#tpu.dimension_semantics<arbitrary>], iteration_bounds = array<i64: 1>, scalar_prefetch = 0 : i64, scratch_operands = 3 : i64, tpu.core_type = #tpu.core_type<tc>, window_params = [{pipeline_mode = #tpu.pipeline_mode<synchronous>, transform_indices = @transform_0, window_bounds = array<i64: 16, 16>}, {pipeline_mode = #tpu.pipeline_mode<synchronous>, transform_indices = @transform_1, window_bounds = array<i64: 2, 16>}, {pipeline_mode = #tpu.pipeline_mode<synchronous>, transform_indices = @transform_2, window_bounds = array<i64: 16, 128>}, {pipeline_mode = #tpu.pipeline_mode<synchronous>, transform_indices = @transform_3, window_bounds = array<i64: 32, 128>}, {pipeline_mode = #tpu.pipeline_mode<synchronous>, transform_indices = @transform_4, window_bounds = array<i64: 1, 128>}, {pipeline_mode = #tpu.pipeline_mode<synchronous>, transform_indices = @transform_5, window_bounds = array<i64: 32, 16>}, {pipeline_mode = #tpu.pipeline_mode<synchronous>, transform_indices = @transform_6, window_bounds = array<i64: 1, 16>}, {pipeline_mode = #tpu.pipeline_mode<synchronous>, transform_indices = @transform_7, window_bounds = array<i64: 32, 16>}, {pipeline_mode = #tpu.pipeline_mode<synchronous>, transform_indices = @transform_8, window_bounds = array<i64: 1, 16>}, {pipeline_mode = #tpu.pipeline_mode<synchronous>, transform_indices = @transform_9, window_bounds = array<i64: 2, 16>}]} {
    %c0 = arith.constant 0 : index
    %c0_0 = arith.constant 0 : index
    %0 = vector.load %arg1[%c0, %c0_0] : memref<16x16xf32, #tpu.memory_space<vmem>>, vector<16x16xf32>
    %c0_1 = arith.constant 0 : index
    %c0_2 = arith.constant 0 : index
    %1 = vector.load %arg3[%c0_1, %c0_2] : memref<16x128xf32, #tpu.memory_space<vmem>>, vector<16x128xf32>
    %cst = arith.constant dense<0.000000e+00> : vector<16x128xf32>
    %2 = tpu.matmul %0, %1, %cst {dimension_numbers = #tpu.dot_dimension_numbers<[1], [0], [0], [1], [0, 0, 1, 1], [], []>} : vector<16x16xf32>, vector<16x128xf32>, vector<16x128xf32> -> vector<16x128xf32>
    %c0_3 = arith.constant 0 : index
    %c0_4 = arith.constant 0 : index
    %3 = vector.load %arg5[%c0_3, %c0_4] : memref<1x128xf32, #tpu.memory_space<vmem>>, vector<1x128xf32>
    %4 = vector.broadcast %3 : vector<1x128xf32> to vector<16x128xf32>
    %5 = arith.addf %2, %4 : vector<16x128xf32>
    %c0_5 = arith.constant 0 : index
    %c0_6 = arith.constant 0 : index
    %6 = vector.load %arg13[%c0_5, %c0_6] : memref<16x128xf32, #tpu.memory_space<vmem>>, vector<16x128xf32>
    tpu.vector_store %arg13[%c0_5, %c0_6], %5 {strides = array<i32>} : memref<16x128xf32, #tpu.memory_space<vmem>>, vector<16x128xf32>,
    %cst_7 = arith.constant 0.000000e+00 : f32
    %7 = vector.broadcast %cst_7 : f32 to vector<2x32xf32>
    %c0_8 = arith.constant 0 : index
    %c0_9 = arith.constant 0 : index
    %8 = vector.load %arg11[%c0_8, %c0_9] : memref<2x32xf32, #tpu.memory_space<vmem>>, vector<2x32xf32>
    tpu.vector_store %arg11[%c0_8, %c0_9], %7 {strides = array<i32>} : memref<2x32xf32, #tpu.memory_space<vmem>>, vector<2x32xf32>,
    %cst_10 = arith.constant 0.000000e+00 : f32
    %9 = vector.broadcast %cst_10 : f32 to vector<2x32xf32>
    %c0_11 = arith.constant 0 : index
    %c0_12 = arith.constant 0 : index
    %10 = vector.load %arg12[%c0_11, %c0_12] : memref<2x32xf32, #tpu.memory_space<vmem>>, vector<2x32xf32>
    tpu.vector_store %arg12[%c0_11, %c0_12], %9 {strides = array<i32>} : memref<2x32xf32, #tpu.memory_space<vmem>>, vector<2x32xf32>,
    %c0_i32 = arith.constant 0 : i32
    %c8_i32 = arith.constant 8 : i32
    %11 = arith.addi %c0_i32, %c8_i32 : i32
    %c1_i32 = arith.constant 1 : i32
    scf.for %arg14 = %c0_i32 to %11 step %c1_i32  : i32 {
      %c1_i32_31 = arith.constant 1 : i32
      %30 = arith.muli %arg14, %c1_i32_31 : i32
      %c0_i32_32 = arith.constant 0 : i32
      %31 = arith.addi %c0_i32_32, %30 : i32
      %c2_i32 = arith.constant 2 : i32
      %32 = arith.muli %31, %c2_i32 : i32
      %33 = arith.index_cast %32 : i32 to index
      %c0_33 = arith.constant 0 : index
      %34 = vector.load %arg13[%33, %c0_33] : memref<16x128xf32, #tpu.memory_space<vmem>>, vector<2x128xf32>
      %c0_34 = arith.constant 0 : index
      %c0_35 = arith.constant 0 : index
      %35 = vector.load %arg11[%c0_34, %c0_35] : memref<2x32xf32, #tpu.memory_space<vmem>>, vector<2x32xf32>
      %c0_36 = arith.constant 0 : index
      %c0_37 = arith.constant 0 : index
      %36 = vector.load %arg4[%c0_36, %c0_37] : memref<32x128xf32, #tpu.memory_space<vmem>>, vector<32x128xf32>
      %cst_38 = arith.constant dense<0.000000e+00> : vector<2x128xf32>
      %37 = tpu.matmul %35, %36, %cst_38 {dimension_numbers = #tpu.dot_dimension_numbers<[1], [0], [0], [1], [0, 0, 1, 1], [], []>} : vector<2x32xf32>, vector<32x128xf32>, vector<2x128xf32> -> vector<2x128xf32>
      %38 = arith.addf %34, %37 : vector<2x128xf32>
      %39 = vector.extract_strided_slice %38 {offsets = [0, 0], sizes = [2, 32], strides = [1, 1]} : vector<2x128xf32> to vector<2x32xf32>
      %cst_39 = arith.constant 0.000000e+00 : f32
      %40 = vector.broadcast %cst_39 : f32 to vector<2x32xf32>
      %41 = arith.subf %40, %39 : vector<2x32xf32>
      %42 = math.exp %41 : vector<2x32xf32>
      %cst_40 = arith.constant 1.000000e+00 : f32
      %43 = vector.broadcast %cst_40 : f32 to vector<2x32xf32>
      %44 = arith.addf %43, %42 : vector<2x32xf32>
      %cst_41 = arith.constant 1.000000e+00 : f32
      %45 = vector.broadcast %cst_41 : f32 to vector<2x32xf32>
      %46 = arith.divf %45, %44 : vector<2x32xf32>
      %47 = vector.extract_strided_slice %38 {offsets = [0, 32], sizes = [2, 32], strides = [1, 1]} : vector<2x128xf32> to vector<2x32xf32>
      %cst_42 = arith.constant 0.000000e+00 : f32
      %48 = vector.broadcast %cst_42 : f32 to vector<2x32xf32>
      %49 = arith.subf %48, %47 : vector<2x32xf32>
      %50 = math.exp %49 : vector<2x32xf32>
      %cst_43 = arith.constant 1.000000e+00 : f32
      %51 = vector.broadcast %cst_43 : f32 to vector<2x32xf32>
      %52 = arith.addf %51, %50 : vector<2x32xf32>
      %cst_44 = arith.constant 1.000000e+00 : f32
      %53 = vector.broadcast %cst_44 : f32 to vector<2x32xf32>
      %54 = arith.divf %53, %52 : vector<2x32xf32>
      %55 = vector.extract_strided_slice %38 {offsets = [0, 64], sizes = [2, 32], strides = [1, 1]} : vector<2x128xf32> to vector<2x32xf32>
      %56 = math.tanh %55 : vector<2x32xf32>
      %57 = vector.extract_strided_slice %38 {offsets = [0, 96], sizes = [2, 32], strides = [1, 1]} : vector<2x128xf32> to vector<2x32xf32>
      %cst_45 = arith.constant 0.000000e+00 : f32
      %58 = vector.broadcast %cst_45 : f32 to vector<2x32xf32>
      %59 = arith.subf %58, %57 : vector<2x32xf32>
      %60 = math.exp %59 : vector<2x32xf32>
      %cst_46 = arith.constant 1.000000e+00 : f32
      %61 = vector.broadcast %cst_46 : f32 to vector<2x32xf32>
      %62 = arith.addf %61, %60 : vector<2x32xf32>
      %cst_47 = arith.constant 1.000000e+00 : f32
      %63 = vector.broadcast %cst_47 : f32 to vector<2x32xf32>
      %64 = arith.divf %63, %62 : vector<2x32xf32>
      %c0_48 = arith.constant 0 : index
      %c0_49 = arith.constant 0 : index
      %65 = vector.load %arg12[%c0_48, %c0_49] : memref<2x32xf32, #tpu.memory_space<vmem>>, vector<2x32xf32>
      %66 = arith.mulf %54, %65 : vector<2x32xf32>
      %67 = arith.mulf %46, %56 : vector<2x32xf32>
      %68 = arith.addf %66, %67 : vector<2x32xf32>
      %c0_50 = arith.constant 0 : index
      %c0_51 = arith.constant 0 : index
      %69 = vector.load %arg12[%c0_50, %c0_51] : memref<2x32xf32, #tpu.memory_space<vmem>>, vector<2x32xf32>
      tpu.vector_store %arg12[%c0_50, %c0_51], %68 {strides = array<i32>} : memref<2x32xf32, #tpu.memory_space<vmem>>, vector<2x32xf32>,
      %70 = math.tanh %68 : vector<2x32xf32>
      %71 = arith.mulf %64, %70 : vector<2x32xf32>
      %c0_52 = arith.constant 0 : index
      %c0_53 = arith.constant 0 : index
      %72 = vector.load %arg11[%c0_52, %c0_53] : memref<2x32xf32, #tpu.memory_space<vmem>>, vector<2x32xf32>
      tpu.vector_store %arg11[%c0_52, %c0_53], %71 {strides = array<i32>} : memref<2x32xf32, #tpu.memory_space<vmem>>, vector<2x32xf32>,
    }
    %c8_i32_13 = arith.constant 8 : i32
    %c0_14 = arith.constant 0 : index
    %c0_15 = arith.constant 0 : index
    %12 = vector.load %arg11[%c0_14, %c0_15] : memref<2x32xf32, #tpu.memory_space<vmem>>, vector<2x32xf32>
    %c0_16 = arith.constant 0 : index
    %c0_17 = arith.constant 0 : index
    %13 = vector.load %arg6[%c0_16, %c0_17] : memref<32x16xf32, #tpu.memory_space<vmem>>, vector<32x16xf32>
    %cst_18 = arith.constant dense<0.000000e+00> : vector<2x16xf32>
    %14 = tpu.matmul %12, %13, %cst_18 {dimension_numbers = #tpu.dot_dimension_numbers<[1], [0], [0], [1], [0, 0, 1, 1], [], []>} : vector<2x32xf32>, vector<32x16xf32>, vector<2x16xf32> -> vector<2x16xf32>
    %c0_19 = arith.constant 0 : index
    %c0_20 = arith.constant 0 : index
    %15 = vector.load %arg7[%c0_19, %c0_20] : memref<1x16xf32, #tpu.memory_space<vmem>>, vector<1x16xf32>
    %16 = vector.broadcast %15 : vector<1x16xf32> to vector<2x16xf32>
    %17 = arith.addf %14, %16 : vector<2x16xf32>
    %c0_21 = arith.constant 0 : index
    %c0_22 = arith.constant 0 : index
    %18 = vector.load %arg8[%c0_21, %c0_22] : memref<32x16xf32, #tpu.memory_space<vmem>>, vector<32x16xf32>
    %cst_23 = arith.constant dense<0.000000e+00> : vector<2x16xf32>
    %19 = tpu.matmul %12, %18, %cst_23 {dimension_numbers = #tpu.dot_dimension_numbers<[1], [0], [0], [1], [0, 0, 1, 1], [], []>} : vector<2x32xf32>, vector<32x16xf32>, vector<2x16xf32> -> vector<2x16xf32>
    %c0_24 = arith.constant 0 : index
    %c0_25 = arith.constant 0 : index
    %20 = vector.load %arg9[%c0_24, %c0_25] : memref<1x16xf32, #tpu.memory_space<vmem>>, vector<1x16xf32>
    %21 = vector.broadcast %20 : vector<1x16xf32> to vector<2x16xf32>
    %22 = arith.addf %19, %21 : vector<2x16xf32>
    %c0_26 = arith.constant 0 : index
    %c0_27 = arith.constant 0 : index
    %23 = vector.load %arg2[%c0_26, %c0_27] : memref<2x16xf32, #tpu.memory_space<vmem>>, vector<2x16xf32>
    %cst_28 = arith.constant 5.000000e-01 : f32
    %24 = vector.broadcast %cst_28 : f32 to vector<2x16xf32>
    %25 = arith.mulf %24, %22 : vector<2x16xf32>
    %26 = math.exp %25 : vector<2x16xf32>
    %27 = arith.mulf %23, %26 : vector<2x16xf32>
    %28 = arith.addf %17, %27 : vector<2x16xf32>
    %c0_29 = arith.constant 0 : index
    %c0_30 = arith.constant 0 : index
    %29 = vector.load %arg10[%c0_29, %c0_30] : memref<2x16xf32, #tpu.memory_space<vmem>>, vector<2x16xf32>
    tpu.vector_store %arg10[%c0_29, %c0_30], %28 {strides = array<i32>} : memref<2x16xf32, #tpu.memory_space<vmem>>, vector<2x16xf32>,
    return
  }
  func.func @transform_0(%arg0: i32) -> (i32, i32) {
    %c0_i32 = arith.constant 0 : i32
    %c0_i32_0 = arith.constant 0 : i32
    %c0_i32_1 = arith.constant 0 : i32
    return %c0_i32, %c0_i32_0 : i32, i32
  }
  func.func @transform_1(%arg0: i32) -> (i32, i32) {
    %c0_i32 = arith.constant 0 : i32
    %c0_i32_0 = arith.constant 0 : i32
    %c0_i32_1 = arith.constant 0 : i32
    return %c0_i32, %c0_i32_0 : i32, i32
  }
  func.func @transform_2(%arg0: i32) -> (i32, i32) {
    %c0_i32 = arith.constant 0 : i32
    %c0_i32_0 = arith.constant 0 : i32
    %c0_i32_1 = arith.constant 0 : i32
    return %c0_i32, %c0_i32_0 : i32, i32
  }
  func.func @transform_3(%arg0: i32) -> (i32, i32) {
    %c0_i32 = arith.constant 0 : i32
    %c0_i32_0 = arith.constant 0 : i32
    %c0_i32_1 = arith.constant 0 : i32
    return %c0_i32, %c0_i32_0 : i32, i32
  }
  func.func @transform_4(%arg0: i32) -> (i32, i32) {
    %c0_i32 = arith.constant 0 : i32
    %c0_i32_0 = arith.constant 0 : i32
    %c0_i32_1 = arith.constant 0 : i32
    return %c0_i32, %c0_i32_0 : i32, i32
  }
  func.func @transform_5(%arg0: i32) -> (i32, i32) {
    %c0_i32 = arith.constant 0 : i32
    %c0_i32_0 = arith.constant 0 : i32
    %c0_i32_1 = arith.constant 0 : i32
    return %c0_i32, %c0_i32_0 : i32, i32
  }
  func.func @transform_6(%arg0: i32) -> (i32, i32) {
    %c0_i32 = arith.constant 0 : i32
    %c0_i32_0 = arith.constant 0 : i32
    %c0_i32_1 = arith.constant 0 : i32
    return %c0_i32, %c0_i32_0 : i32, i32
  }
  func.func @transform_7(%arg0: i32) -> (i32, i32) {
    %c0_i32 = arith.constant 0 : i32
    %c0_i32_0 = arith.constant 0 : i32
    %c0_i32_1 = arith.constant 0 : i32
    return %c0_i32, %c0_i32_0 : i32, i32
  }
  func.func @transform_8(%arg0: i32) -> (i32, i32) {
    %c0_i32 = arith.constant 0 : i32
    %c0_i32_0 = arith.constant 0 : i32
    %c0_i32_1 = arith.constant 0 : i32
    return %c0_i32, %c0_i32_0 : i32, i32
  }
  func.func @transform_9(%arg0: i32) -> (i32, i32) {
    %c0_i32 = arith.constant 0 : i32
    %c0_i32_0 = arith.constant 0 : i32
    %c0_i32_1 = arith.constant 0 : i32
    return %c0_i32, %c0_i32_0 : i32, i32
  }
}

</mosaic_0001>

<bundles_post_ra>
// kernel: tpu_custom_call.1
= control target key start
LH: loop header
LB: loop body
LE: loop exit
PB: predicated region body
PF: predicated region fallthrough
CT: control target
= control target key end

     0   :  { %14 = vsyncpa [#allocation6], 0  ;;  %vm44_vm0 = vcmask 130048   ;;  %vm128_vm1 = vcmask 254976   ;;  %v605_v5 = vmov 0.0   ;;  %s757_s0 = inlined_call_operand.vmem [shape: f32[16,16], index: 0, kind: input, shape index: {}]   ;;  %s758_s1 = inlined_call_operand.vmem [shape: f32[2,16], index: 1, kind: input, shape index: {}]   ;;  %s759_s2 = inlined_call_operand.vmem [shape: f32[16,128], index: 2, kind: input, shape index: {}]   ;;  %s760_s3 = inlined_call_operand.vmem [shape: f32[32,128], index: 3, kind: input, shape index: {}]   ;;  %s761_s4 = inlined_call_operand.vmem [shape: f32[1,128], index: 4, kind: input, shape index: {}]   ;;  %s762_s5 = inlined_call_operand.vmem [shape: f32[32,16], index: 5, kind: input, shape index: {}]   ;;  %s763_s6 = inlined_call_operand.vmem [shape: f32[1,16], index: 6, kind: input, shape index: {}]   ;;  %s764_s7 = inlined_call_operand.vmem [shape: f32[32,16], index: 7, kind: input, shape index: {}]   ;;  %s765_s8 = inlined_call_operand.vmem [shape: f32[1,16], index: 8, kind: input, shape index: {}]   ;;  %s766_s9 = inlined_call_operand.hbm [shape: f32[2,16], index: 9, kind: output, shape index: {}]  }
   0x1   :  { %v35_v0 = vld [vmem:[%s759_s2] sm:$0xff]  ;;  %v36_v1 = vld [vmem:[%s759_s2 + $0x8] sm:$0xff]  ;;  %129 = vst.msk [vmem:[#allocation2] sm:$0x3] %vm128_vm1, %v605_v5  ;;  %130 = vst.msk [vmem:[#allocation3] sm:$0x3] %vm128_vm1, %v605_v5 }
   0x2   :  { %v523_v2 = vpack.c.bf16 %v36_v1, %v35_v0  ;;  %v33_v3 = vld [vmem:[%s757_s0] sm:$0xff]  ;;  %v34_v4 = vld [vmem:[%s757_s0 + $0x8] sm:$0xff]  ;;  %s684_s0 = smov 0  }
   0x3   :  { %487 = vmatprep.mubr.msk.f32.mxu0 %vm44_vm0, %v33_v3  ;;  %v455_v6 = vld [vmem:[%s761_s4] ss:$0 sm:$0xff] }
   0x4   :  { %524 = vmatprep.subr.bf16.mxu0 %v523_v2 }
   0x5   :  { %526 = vmatpush3.bf16.msra.mxu0 %v523_v2 }
   0x8   :  { %488 = vmatmul.mubr.msk.f32.vlgmr.msra.gmra.mrb[0].mxu0 %vm44_vm0, %v34_v4 }
  0xdb   :  { %v489_v7 = vpop.f32.mrb[0].mxu0 }
  0xdc   :  { %v123_v8 = vadd.f32 %v489_v7, %v455_v6  ;;  %v117_v9 = vpop.f32.mrb[1].mxu0 }
  0xdd   :  { %v118_v10 = vadd.f32 %v455_v6, %v117_v9 }
  0xde   :  { %127 = vst [vmem:[#allocation4 + $0x8] sm:$0xff] %v123_v8 }
  0xdf   :  { %126 = vst [vmem:[#allocation4] sm:$0xff] %v118_v10 }
  0xe0 LB: > { %v141_v11 = vld [vmem:[%s760_s3] sm:$0xff]  ;;  %v142_v12 = vld [vmem:[%s760_s3 + $0x8] sm:$0xff]  ;;  %v143_v13 = vld [vmem:[%s760_s3 + $0x10] sm:$0xff]  ;;  %v606_v14 = vmov 0.0|0.0   ;;  %vm607_vm2 = vmmov 0   ;;  %v608_v17 = vmov 0.0   ;;  %s603_s0 = sphi %s684_s0, %s136_s0  }
  0xe1   : > { %527 = vmatprep.subr.bf16.mxu0 %v606_v14  ;;  %v528_v15 = vpack.c.bf16 %v142_v12, %v141_v11  ;;  %v144_v16 = vld [vmem:[%s760_s3 + $0x18] sm:$0xff]  ;;  %498 = vmatprep.mubr.msk.f32.mxu0 %vm607_vm2, %v608_v17  ;;  %v140_v19 = vld [vmem:[#allocation2] sm:$0x3]  ;;  %vm145_vm3 = vcmask 261120   ;;  %s458_s25 = sshll.u32 %s603_s0, 1  ;;  %s609_s27 = smov 64  }
  0xe2   : > { %v531_v18 = vpack.c.bf16 %v144_v16, %v143_v13  ;;  %s138_s26 = scalar_lea.vmem [#allocation4], %s458_s25  ;;  %v227_v25 = vld [vmem:[#allocation3] sm:$0x3]  ;;  %s610_s28 = smov 32  }
  0xe3   : > { %529 = vmatpush3.bf16.msra.mxu0 %v528_v15  ;;  %s611_s29 = smov 96   ;;  %s136_s0 = sadd.s32 1, %s603_s0  }
  0xe4   : > { %530 = vmatprep.subr.bf16.mxu0 %v606_v14  ;;  %p133_p0 = scmp.ge.s32.totalorder %s136_s0, 8  }
  0xe5   :  { %v345_v42 = vld [vmem:[%s764_s7] sm:$0xff] (%p133_p0)  ;;  %v346_v43 = vld [vmem:[%s764_s7 + $0x8] sm:$0xff] (%p133_p0)  ;;  %v347_v44 = vld [vmem:[%s764_s7 + $0x10] sm:$0xff] (%p133_p0)  ;;  %v612_v45 = vmov (%p133_p0), 0.0|0.0   ;;  %vm613_vm4 = vmmov (%p133_p0), 0   ;;  %s614_s25 = smov (%p133_p0), [#allocation5]  }
  0xe6   : > { %v139_v20 = vld [vmem:[%s138_s26] sm:$0x3]  ;;  %539 = vmatprep.subr.bf16.mxu1 (%p133_p0), %v612_v45  ;;  %v540_v46 = vpack.c.bf16 (%p133_p0), %v346_v43, %v345_v42  ;;  %v348_v47 = vld [vmem:[%s764_s7 + $0x18] sm:$0xff] (%p133_p0)  ;;  %520 = vmatprep.mubr.msk.f32.mxu1 (%p133_p0), %vm613_vm4, %v605_v5  ;;  %v261_v49 = vld [vmem:[%s762_s5 + $0x8] sm:$0xff] (%p133_p0)  ;;  %vm432_vm5 = vcmask (%p133_p0), 123904  }
  0xe7   : > { %532 = vmatpush3.bf16.msra.mxu0 %v531_v18  ;;  %v260_v48 = vld [vmem:[%s762_s5] sm:$0xff] (%p133_p0)  ;;  %v262_v50 = vld [vmem:[%s762_s5 + $0x10] sm:$0xff] (%p133_p0)  ;;  %v263_v51 = vld [vmem:[%s762_s5 + $0x18] sm:$0xff] (%p133_p0)  ;;  %v543_v52 = vpack.c.bf16 (%p133_p0), %v348_v47, %v347_v44 }
  0xe8   :  { %533 = vmatprep.subr.bf16.mxu0 (%p133_p0), %v612_v45  ;;  %541 = vmatpush3.bf16.msra.mxu1 (%p133_p0), %v540_v46  ;;  %v534_v53 = vpack.c.bf16 (%p133_p0), %v261_v49, %v260_v48  ;;  %v537_v54 = vpack.c.bf16 (%p133_p0), %v263_v51, %v262_v50  ;;  %v462_v56 = vld [vmem:[%s765_s8] ss:$0 sm:$0xff] (%p133_p0)  ;;  %s440_s8 = sshll.u32 (%p133_p0), %s614_s25, 4  ;;  %s441_s8 = int_to_ptr.vmem [resolvable:$true] %s440_s8 }
  0xe9   :  { %542 = vmatprep.subr.bf16.mxu1 (%p133_p0), %v612_v45  ;;  %v460_v0 = vld [vmem:[%s763_s6] ss:$0 sm:$0xff] (%p133_p0)  ;;  %s573_s26 = scalar_lea.vmem (%p133_p0), %s441_s8, 32  ;;  %p578_p2 = scmp.lt.s32.totalorder (%p133_p0), %s441_s8, %s441_s8 }
  0xea   : > { %499 = vmatmul.mubr.msk.f32.vlgmr.msra.gmra.mrb[0].mxu0 %vm145_vm3, %v140_v19  ;;  %v426_v1 = vld [vmem:[%s758_s1] sm:$0x3] (%p133_p0)  ;;  %p574_p1 = scmp.ne.s32.totalorder (%p133_p0), %s441_s8, %s573_s26  ;;  %p579_p3 = scmp.lt.s32.totalorder (%p133_p0), %s573_s26, %s573_s26 }
  0xeb   :  { %509 = vmatprep.mubr.msk.f32.mxu0 (%p133_p0), %vm613_vm4, %v605_v5  ;;  %535 = vmatpush3.bf16.msra.mxu0 (%p133_p0), %v534_v53 }
  0xec   :  { %536 = vmatprep.subr.bf16.mxu0 (%p133_p0), %v612_v45  ;;  %544 = vmatpush3.bf16.msra.mxu1 (%p133_p0), %v543_v52  ;;  %p580_p4 = por (%p133_p0), %p579_p3, %p578_p2 }
  0xee   :  { %p581_p5 = pnand (%p133_p0), %p580_p4, %p574_p1 }
  0xef   :  { %538 = vmatpush3.bf16.msra.mxu0 (%p133_p0), %v537_v54 }
 0x1bd   : > { %v215_v21 = vpop.f32.mrb[0].mxu0 }
 0x1be   : > { %v219_v22 = vadd.f32 %v215_v21, %v139_v20  ;;  %v500_v23 = vpop.f32.mrb[1].mxu0 }
 0x1c0   : > { %563 = vtanh.f32 %v219_v22  ;;  %v220_v26 = vsub.f32 0.0, %v219_v22 }
 0x1c2   : > { %v221_v27 = vmul.f32 1.442695, %v220_v26 }
 0x1c4   : > { %565 = vpow2.f32 %v221_v27 }
 0x1ca   : > { %v564_v24 = vpop.eup %563 }
 0x1cb   : > { %234 = vrot.lane.b32.xlu0 %v564_v24, %s609_s27 }
 0x1ce   : > { %v566_v28 = vpop.eup %565 }
 0x1cf   : > { %229 = vrot.lane.b32.xlu0 %v227_v25, %s610_s28  ;;  %v223_v29 = vadd.f32 1.0, %v566_v28 }
 0x1d1   : > { %567 = vrcp.f32 %v223_v29 }
 0x1db   : > { %v568_v30 = vpop.eup %567 }
 0x23d   : > { %v235_v31 = vpop.permute.xlu0 %234 }
 0x23e   : > { %v237_v32 = vmul.f32 %v568_v30, %v235_v31 }
 0x240   : > { %239 = vrot.lane.b32.xlu1 %v237_v32, %s610_s28 }
 0x241   : > { %v230_v33 = vpop.permute.xlu0 %229 }
 0x242   : > { %v232_v34 = vmul.f32 %v568_v30, %v230_v33 }
 0x2b2   : > { %v240_v35 = vpop.permute.xlu1 %239 }
 0x2b3   : > { %v242_v36 = vadd.f32 %v240_v35, %v232_v34 }
 0x2b5   : > { %569 = vtanh.f32 %v242_v36  ;;  %244 = vrot.lane.b32.xlu0 %v242_v36, %s611_s29 }
 0x2bf   : > { %v570_v37 = vpop.eup %569 }
 0x2c0   : > { %250 = vrot.lane.b32.xlu1 %v570_v37, %s609_s27 }
 0x327   : > { %v245_v38 = vpop.permute.xlu0 %244 }
 0x328   : > { %247 = vst.msk [vmem:[#allocation3] sm:$0x3] %vm128_vm1, %v245_v38 }
 0x332   : > { %v251_v39 = vpop.permute.xlu1 %250 }
 0x333   : > { %v253_v40 = vmul.f32 %v568_v30, %v251_v39 }
 0x335   : > { %255 = vrot.lane.b32.xlu1 %v253_v40, %s610_s28 }
 0x3a2   :  { %135 = sbr.rel (!%p133_p0) target bundleno = 224 (0xe0), region = 64 }
 0x3a7   : > { %v256_v41 = vpop.permute.xlu1 %255 }
 0x3a8   : > { %258 = vst.msk [vmem:[#allocation2] sm:$0x3] %vm128_vm1, %v256_v41 }
 0x3af   :  { %v259_v55 = vld [vmem:[#allocation2] sm:$0x3] }
 0x3b0   :  { %521 = vmatmul.mubr.msk.f32.vlgmr.msra.gmra.mrb[0].mxu1 %vm145_vm3, %v259_v55  ;;  %510 = vmatmul.mubr.msk.f32.vlgmr.msra.gmra.mrb[0].mxu0 %vm145_vm3, %v259_v55 }
 0x483   :  { %v422_v57 = vpop.f32.mrb[0].mxu1  ;;  %v341_v60 = vpop.f32.mrb[0].mxu0 }
 0x484   :  { %v423_v58 = vadd.f32 %v462_v56, %v422_v57  ;;  %v522_v59 = vpop.f32.mrb[1].mxu1  ;;  %v511_v62 = vpop.f32.mrb[1].mxu0  ;;  %v342_v2 = vadd.f32 %v460_v0, %v341_v60 }
 0x486   :  { %v427_v61 = vmul.f32 0.5, %v423_v58 }
 0x488   :  { %v428_v63 = vmul.f32 1.442695, %v427_v61 }
 0x48a   :  { %571 = vpow2.f32 %v428_v63 }
 0x494   :  { %v572_v3 = vpop.eup %571 }
 0x495   :  { %v430_v4 = vmul.f32 %v572_v3, %v426_v1 }
 0x497   :  { %v431_v5 = vadd.f32 %v430_v4, %v342_v2 }
 0x499   :  { %433 = vst.msk [vmem:[#allocation5] sm:$0x3] %vm432_vm5, %v431_v5 }
 0x49a   :  { %584 = shalt.err (!%p581_p5)
}
 0x49b   :  { %s585_s1 = scalar_lea.hbm %s766_s9, 32 }
 0x49c   :  { %p586_p6 = scmp.ne.s32.totalorder %s766_s9, %s585_s1  ;;  %p589_p7 = scmp.lt.u32.totalorder %s585_s1, %s766_s9 }
 0x49e   :  { %p591_p8 = pnand %p589_p7, %p586_p6 }
 0x4a0   :  { %594 = shalt.err (!%p591_p8)
}
 0x4a1   :  { %443 = dma.vmem_to_hbm [thread:$0]  %s441_s8, 32, %s766_s9, [#allocation6]  }
 0x4a2   :  { %599 = dma.done.wait [#allocation6], 32  }
 0x4a3   :  { %600 = vsyncadd [#allocation6], 4294967264 }
 0x4a4   :  { %447 = vsyncpa [#allocation6], 1 }

</bundles_post_ra>
